<compile_context>
chip_gen: v7x
topology: tpu7x:2x2x1
jax: 0.10.0
libtpu: 0.0.40
codegen_flags: <defaults>
</compile_context>

<pallas_src>
from functools import partial

import jax
import jax.numpy as jnp
from jax.experimental import pallas as pl
from jax.experimental.pallas import tpu as pltpu


# ---------------------------------------------------------------------------
# Pallas kernels
# ---------------------------------------------------------------------------
def _conv_bn_kernel(p_ref, w_ref, s_ref, o_ref, *, inv_m):
    """Fused conv-as-matmul + bias + ReLU + BatchNorm (training statistics).

    p_ref: (K, M)    bf16  im2col patches, K = Cin*9, M = N*OH*OW (lane-dense)
    w_ref: (Cout, K) bf16  conv weight, columns ordered (cin, kh, kw)
    s_ref: (Cout, 3) f32   packed [bias | gamma | beta]
    o_ref: (Cout, M) f32   normalized activations
    """
    acc = jnp.dot(w_ref[...], p_ref[...], preferred_element_type=jnp.float32)
    acc = acc + s_ref[:, 0:1]                 # conv bias
    acc = jnp.maximum(acc, 0.0)               # ReLU (bn_before_relu=False -> ReLU first)
    # One-pass per-channel batch statistics (reduce over the lane axis M).
    mean = jnp.sum(acc, axis=1, keepdims=True) * inv_m
    ex2 = jnp.sum(acc * acc, axis=1, keepdims=True) * inv_m
    var = ex2 - mean * mean                   # biased variance (BatchNorm2d train mode)
    inv = jax.lax.rsqrt(var + 1e-5)
    o_ref[...] = (acc - mean) * (inv * s_ref[:, 1:2]) + s_ref[:, 2:3]


def conv_bias_relu_bn(patches, w2d, scale_shift):
    """patches: (K, M); w2d: (Cout, K); scale_shift: (Cout, 3) -> (Cout, M) f32."""
    K, M = patches.shape
    Cout, K2 = w2d.shape
    assert K == K2
    cost = pl.CostEstimate(
        flops=2 * Cout * K * M + 6 * Cout * M,
        transcendentals=Cout,
        bytes_accessed=2 * (K * M + Cout * K) + 4 * (3 * Cout + Cout * M),
    )
    return pl.pallas_call(
        partial(_conv_bn_kernel, inv_m=1.0 / M),
        out_shape=jax.ShapeDtypeStruct((Cout, M), jnp.float32),
        in_specs=[
            pl.BlockSpec(memory_space=pltpu.MemorySpace.VMEM),
            pl.BlockSpec(memory_space=pltpu.MemorySpace.VMEM),
            pl.BlockSpec(memory_space=pltpu.MemorySpace.VMEM),
        ],
        out_specs=pl.BlockSpec(memory_space=pltpu.MemorySpace.VMEM),
        cost_estimate=cost,
    )(patches.astype(jnp.bfloat16), w2d.astype(jnp.bfloat16),
      scale_shift.astype(jnp.float32))


def _linear_kernel(x_ref, w_ref, b_ref, o_ref):
    acc = jnp.dot(x_ref[...], w_ref[...], preferred_element_type=jnp.float32)
    o_ref[...] = acc + b_ref[...]


def linear(x, w, b):
    """x: (B, K); w: (K, N); b: (N,) -> (B, N) f32."""
    B, K = x.shape
    K2, N = w.shape
    assert K == K2
    cost = pl.CostEstimate(
        flops=2 * B * K * N,
        transcendentals=0,
        bytes_accessed=2 * (B * K + K * N) + 4 * (N + B * N),
    )
    return pl.pallas_call(
        _linear_kernel,
        out_shape=jax.ShapeDtypeStruct((B, N), jnp.float32),
        in_specs=[
            pl.BlockSpec(memory_space=pltpu.MemorySpace.VMEM),
            pl.BlockSpec(memory_space=pltpu.MemorySpace.VMEM),
            pl.BlockSpec(memory_space=pltpu.MemorySpace.VMEM),
        ],
        out_specs=pl.BlockSpec(memory_space=pltpu.MemorySpace.VMEM),
        cost_estimate=cost,
    )(x.astype(jnp.bfloat16), w.astype(jnp.bfloat16),
      b.reshape(1, N).astype(jnp.float32))


# ---------------------------------------------------------------------------
# Glue: patch extraction (jit-fused XLA), parameter init, forward
# ---------------------------------------------------------------------------
def extract_patches(a_cnhw, kh=3, kw=3):
    """a: (C, N, H, W) -> (C*kh*kw, N*OH*OW); rows (c, di, dj), cols (n, oh, ow)."""
    C, N, H, W = a_cnhw.shape
    OH, OW = H - kh + 1, W - kw + 1
    taps = jnp.stack(
        [a_cnhw[:, :, di:di + OH, dj:dj + OW] for di in range(kh) for dj in range(kw)],
        axis=1,
    )                                    # (C, kh*kw, N, OH, OW)
    return taps.reshape(C * kh * kw, N * OH * OW), (N, OH, OW)


def init_params(key, input_size, ks, d_output, multi=1):
    init_k, h, w = input_size
    last_k = init_k
    convs = []
    for k in ks:
        k = k * multi
        key, k1, k2 = jax.random.split(key, 3)
        # deterministic synthetic init (Conv2d(last_k, k, 3))
        W = jax.random.choice(
            k1, jnp.array([-0.5, -0.25, 0.0, 0.25, 0.5], jnp.float32),
            shape=(k, last_k, 3, 3))
        b = jax.random.uniform(k2, (k,), jnp.float32, -0.5, 0.5)
        gamma = jnp.ones((k,), jnp.float32)     # BatchNorm2d default init
        beta = jnp.zeros((k,), jnp.float32)
        convs.append((W, b, gamma, beta))
        last_k = k
        h -= 2
        w -= 2
    key, k1, k2 = jax.random.split(key, 3)
    Wf = jax.random.choice(
        k1, jnp.array([-0.5, -0.25, 0.0, 0.25, 0.5], jnp.float32),
        shape=(d_output, last_k * h * w))
    bf = jax.random.uniform(k2, (d_output,), jnp.float32, -0.5, 0.5)
    return dict(convs=convs, final=(Wf, bf))


def model_conv_forward(x, params):
    """Matches ModelConv.forward (has_bn=True, bn_before_relu=False, ReLU)."""
    N = x.shape[0]
    a = x.transpose(1, 0, 2, 3)                       # (Cin, N, H, W) channels-major
    hs = []
    for (W, b, gamma, beta) in params['convs']:
        Cout = W.shape[0]
        patches, (N, OH, OW) = extract_patches(a)     # (Cin*9, N*OH*OW)
        w2d = W.reshape(Cout, -1)                     # (Cout, Cin*9), cols (cin, di, dj)
        ss = jnp.stack([b, gamma, beta], axis=1)      # (Cout, 3) packed params
        out = conv_bias_relu_bn(patches, w2d, ss)     # fused Pallas kernel -> (Cout, M)
        a = out.reshape(Cout, N, OH, OW)              # stays channels-major, no transpose
        hs.append(a.transpose(1, 0, 2, 3))            # NCHW only at module boundary
    flat = hs[-1].reshape(N, -1)                      # PyTorch .view(N, -1) on NCHW
    Wf, bf = params['final']
    y = linear(flat, Wf.T, bf)                        # final Linear (Pallas)
    return dict(hs=hs, y=y)


# ---------------------------------------------------------------------------
if __name__ == "__main__":
    key = jax.random.PRNGKey(0)
    key, kx, kp = jax.random.split(key, 3)

    # Config consistent with the module: input_size=(4, 16, 16), ks=[8, 16],
    # d_output=10, batch=2.  Spatial: 16 -> 14 -> 12; flatten = 16*12*12 = 2304.
    input_size = (4, 16, 16)
    ks = [8, 16]
    d_output = 10
    batch = 2

    x = jax.random.normal(kx, (batch,) + input_size, jnp.float32)
    params = init_params(kp, input_size, ks, d_output)

    fwd = jax.jit(model_conv_forward)
    out = fwd(x, params)
    jax.block_until_ready(out)

    assert out['y'].shape == (batch, d_output)
    assert out['hs'][0].shape == (batch, 8, 14, 14)
    assert out['hs'][1].shape == (batch, 16, 12, 12)
    print("KERNEL_OK")
</pallas_src>

<mosaic_0001>
module attributes {stable_mosaic.version = 11 : i64} {
  func.func @_conv_bn_kernel(%arg0: memref<36x392xbf16, #tpu.memory_space<vmem>>, %arg1: memref<8x36xbf16, #tpu.memory_space<vmem>>, %arg2: memref<8x3xf32, #tpu.memory_space<vmem>>, %arg3: memref<8x392xf32, #tpu.memory_space<vmem>>) attributes {dimension_semantics = [], scalar_prefetch = 0 : i64, scratch_operands = 0 : i64, tpu.core_type = #tpu.core_type<tc>} {
    %c0 = arith.constant 0 : index
    %c0_0 = arith.constant 0 : index
    %0 = vector.load %arg1[%c0, %c0_0] : memref<8x36xbf16, #tpu.memory_space<vmem>>, vector<8x36xbf16>
    %c0_1 = arith.constant 0 : index
    %c0_2 = arith.constant 0 : index
    %1 = vector.load %arg0[%c0_1, %c0_2] : memref<36x392xbf16, #tpu.memory_space<vmem>>, vector<36x392xbf16>
    %cst = arith.constant dense<0.000000e+00> : vector<8x392xf32>
    %2 = tpu.matmul %0, %1, %cst {dimension_numbers = #tpu.dot_dimension_numbers<[1], [0], [0], [1], [0, 0, 1, 1], [], []>} : vector<8x36xbf16>, vector<36x392xbf16>, vector<8x392xf32> -> vector<8x392xf32>
    %c0_3 = arith.constant 0 : index
    %c0_4 = arith.constant 0 : index
    %3 = vector.load %arg2[%c0_3, %c0_4] : memref<8x3xf32, #tpu.memory_space<vmem>>, vector<8x1xf32>
    %4 = vector.broadcast %3 : vector<8x1xf32> to vector<8x392xf32>
    %5 = arith.addf %2, %4 : vector<8x392xf32>
    %cst_5 = arith.constant 0.000000e+00 : f32
    %6 = vector.broadcast %cst_5 : f32 to vector<8x392xf32>
    %7 = arith.maximumf %5, %6 : vector<8x392xf32>
    %cst_6 = arith.constant dense<0.000000e+00> : vector<8xf32>
    %8 = vector.multi_reduction <add>, %7, %cst_6 [1] : vector<8x392xf32> to vector<8xf32>
    %9 = vector.shape_cast %8 : vector<8xf32> to vector<8x1xf32>
    %cst_7 = arith.constant 0.00255102036 : f32
    %10 = vector.broadcast %cst_7 : f32 to vector<8x1xf32>
    %11 = arith.mulf %9, %10 : vector<8x1xf32>
    %12 = arith.mulf %7, %7 : vector<8x392xf32>
    %cst_8 = arith.constant dense<0.000000e+00> : vector<8xf32>
    %13 = vector.multi_reduction <add>, %12, %cst_8 [1] : vector<8x392xf32> to vector<8xf32>
    %14 = vector.shape_cast %13 : vector<8xf32> to vector<8x1xf32>
    %cst_9 = arith.constant 0.00255102036 : f32
    %15 = vector.broadcast %cst_9 : f32 to vector<8x1xf32>
    %16 = arith.mulf %14, %15 : vector<8x1xf32>
    %17 = arith.mulf %11, %11 : vector<8x1xf32>
    %18 = arith.subf %16, %17 : vector<8x1xf32>
    %cst_10 = arith.constant 9.99999974E-6 : f32
    %19 = vector.broadcast %cst_10 : f32 to vector<8x1xf32>
    %20 = arith.addf %18, %19 : vector<8x1xf32>
    %21 = math.rsqrt %20 : vector<8x1xf32>
    %22 = vector.broadcast %11 : vector<8x1xf32> to vector<8x392xf32>
    %23 = arith.subf %7, %22 : vector<8x392xf32>
    %c0_11 = arith.constant 0 : index
    %c1 = arith.constant 1 : index
    %24 = vector.load %arg2[%c0_11, %c1] : memref<8x3xf32, #tpu.memory_space<vmem>>, vector<8x1xf32>
    %25 = arith.mulf %21, %24 : vector<8x1xf32>
    %26 = vector.broadcast %25 : vector<8x1xf32> to vector<8x392xf32>
    %27 = arith.mulf %23, %26 : vector<8x392xf32>
    %c0_12 = arith.constant 0 : index
    %c2 = arith.constant 2 : index
    %28 = vector.load %arg2[%c0_12, %c2] : memref<8x3xf32, #tpu.memory_space<vmem>>, vector<8x1xf32>
    %29 = vector.broadcast %28 : vector<8x1xf32> to vector<8x392xf32>
    %30 = arith.addf %27, %29 : vector<8x392xf32>
    %c0_13 = arith.constant 0 : index
    %c0_14 = arith.constant 0 : index
    %31 = vector.load %arg3[%c0_13, %c0_14] : memref<8x392xf32, #tpu.memory_space<vmem>>, vector<8x392xf32>
    tpu.vector_store %arg3[%c0_13, %c0_14], %30 {strides = array<i32>} : memref<8x392xf32, #tpu.memory_space<vmem>>, vector<8x392xf32>,
    return
  }
}

module attributes {stable_mosaic.version = 11 : i64} {
  func.func @_conv_bn_kernel(%arg0: memref<72x288xbf16, #tpu.memory_space<vmem>>, %arg1: memref<16x72xbf16, #tpu.memory_space<vmem>>, %arg2: memref<16x3xf32, #tpu.memory_space<vmem>>, %arg3: memref<16x288xf32, #tpu.memory_space<vmem>>) attributes {dimension_semantics = [], scalar_prefetch = 0 : i64, scratch_operands = 0 : i64, tpu.core_type = #tpu.core_type<tc>} {
    %c0 = arith.constant 0 : index
    %c0_0 = arith.constant 0 : index
    %0 = vector.load %arg1[%c0, %c0_0] : memref<16x72xbf16, #tpu.memory_space<vmem>>, vector<16x72xbf16>
    %c0_1 = arith.constant 0 : index
    %c0_2 = arith.constant 0 : index
    %1 = vector.load %arg0[%c0_1, %c0_2] : memref<72x288xbf16, #tpu.memory_space<vmem>>, vector<72x288xbf16>
    %cst = arith.constant dense<0.000000e+00> : vector<16x288xf32>
    %2 = tpu.matmul %0, %1, %cst {dimension_numbers = #tpu.dot_dimension_numbers<[1], [0], [0], [1], [0, 0, 1, 1], [], []>} : vector<16x72xbf16>, vector<72x288xbf16>, vector<16x288xf32> -> vector<16x288xf32>
    %c0_3 = arith.constant 0 : index
    %c0_4 = arith.constant 0 : index
    %3 = vector.load %arg2[%c0_3, %c0_4] : memref<16x3xf32, #tpu.memory_space<vmem>>, vector<16x1xf32>
    %4 = vector.broadcast %3 : vector<16x1xf32> to vector<16x288xf32>
    %5 = arith.addf %2, %4 : vector<16x288xf32>
    %cst_5 = arith.constant 0.000000e+00 : f32
    %6 = vector.broadcast %cst_5 : f32 to vector<16x288xf32>
    %7 = arith.maximumf %5, %6 : vector<16x288xf32>
    %cst_6 = arith.constant dense<0.000000e+00> : vector<16xf32>
    %8 = vector.multi_reduction <add>, %7, %cst_6 [1] : vector<16x288xf32> to vector<16xf32>
    %9 = vector.shape_cast %8 : vector<16xf32> to vector<16x1xf32>
    %cst_7 = arith.constant 0.00347222225 : f32
    %10 = vector.broadcast %cst_7 : f32 to vector<16x1xf32>
    %11 = arith.mulf %9, %10 : vector<16x1xf32>
    %12 = arith.mulf %7, %7 : vector<16x288xf32>
    %cst_8 = arith.constant dense<0.000000e+00> : vector<16xf32>
    %13 = vector.multi_reduction <add>, %12, %cst_8 [1] : vector<16x288xf32> to vector<16xf32>
    %14 = vector.shape_cast %13 : vector<16xf32> to vector<16x1xf32>
    %cst_9 = arith.constant 0.00347222225 : f32
    %15 = vector.broadcast %cst_9 : f32 to vector<16x1xf32>
    %16 = arith.mulf %14, %15 : vector<16x1xf32>
    %17 = arith.mulf %11, %11 : vector<16x1xf32>
    %18 = arith.subf %16, %17 : vector<16x1xf32>
    %cst_10 = arith.constant 9.99999974E-6 : f32
    %19 = vector.broadcast %cst_10 : f32 to vector<16x1xf32>
    %20 = arith.addf %18, %19 : vector<16x1xf32>
    %21 = math.rsqrt %20 : vector<16x1xf32>
    %22 = vector.broadcast %11 : vector<16x1xf32> to vector<16x288xf32>
    %23 = arith.subf %7, %22 : vector<16x288xf32>
    %c0_11 = arith.constant 0 : index
    %c1 = arith.constant 1 : index
    %24 = vector.load %arg2[%c0_11, %c1] : memref<16x3xf32, #tpu.memory_space<vmem>>, vector<16x1xf32>
    %25 = arith.mulf %21, %24 : vector<16x1xf32>
    %26 = vector.broadcast %25 : vector<16x1xf32> to vector<16x288xf32>
    %27 = arith.mulf %23, %26 : vector<16x288xf32>
    %c0_12 = arith.constant 0 : index
    %c2 = arith.constant 2 : index
    %28 = vector.load %arg2[%c0_12, %c2] : memref<16x3xf32, #tpu.memory_space<vmem>>, vector<16x1xf32>
    %29 = vector.broadcast %28 : vector<16x1xf32> to vector<16x288xf32>
    %30 = arith.addf %27, %29 : vector<16x288xf32>
    %c0_13 = arith.constant 0 : index
    %c0_14 = arith.constant 0 : index
    %31 = vector.load %arg3[%c0_13, %c0_14] : memref<16x288xf32, #tpu.memory_space<vmem>>, vector<16x288xf32>
    tpu.vector_store %arg3[%c0_13, %c0_14], %30 {strides = array<i32>} : memref<16x288xf32, #tpu.memory_space<vmem>>, vector<16x288xf32>,
    return
  }
}

module attributes {stable_mosaic.version = 11 : i64} {
  func.func @_linear_kernel(%arg0: memref<2x2304xbf16, #tpu.memory_space<vmem>>, %arg1: memref<2304x10xbf16, #tpu.memory_space<vmem>>, %arg2: memref<1x10xf32, #tpu.memory_space<vmem>>, %arg3: memref<2x10xf32, #tpu.memory_space<vmem>>) attributes {dimension_semantics = [], scalar_prefetch = 0 : i64, scratch_operands = 0 : i64, tpu.core_type = #tpu.core_type<tc>} {
    %c0 = arith.constant 0 : index
    %c0_0 = arith.constant 0 : index
    %0 = vector.load %arg0[%c0, %c0_0] : memref<2x2304xbf16, #tpu.memory_space<vmem>>, vector<2x2304xbf16>
    %c0_1 = arith.constant 0 : index
    %c0_2 = arith.constant 0 : index
    %1 = vector.load %arg1[%c0_1, %c0_2] : memref<2304x10xbf16, #tpu.memory_space<vmem>>, vector<2304x10xbf16>
    %cst = arith.constant dense<0.000000e+00> : vector<2x10xf32>
    %2 = tpu.matmul %0, %1, %cst {dimension_numbers = #tpu.dot_dimension_numbers<[1], [0], [0], [1], [0, 0, 1, 1], [], []>} : vector<2x2304xbf16>, vector<2304x10xbf16>, vector<2x10xf32> -> vector<2x10xf32>
    %c0_3 = arith.constant 0 : index
    %c0_4 = arith.constant 0 : index
    %3 = vector.load %arg2[%c0_3, %c0_4] : memref<1x10xf32, #tpu.memory_space<vmem>>, vector<1x10xf32>
    %4 = vector.broadcast %3 : vector<1x10xf32> to vector<2x10xf32>
    %5 = arith.addf %2, %4 : vector<2x10xf32>
    %c0_5 = arith.constant 0 : index
    %c0_6 = arith.constant 0 : index
    %6 = vector.load %arg3[%c0_5, %c0_6] : memref<2x10xf32, #tpu.memory_space<vmem>>, vector<2x10xf32>
    tpu.vector_store %arg3[%c0_5, %c0_6], %5 {strides = array<i32>} : memref<2x10xf32, #tpu.memory_space<vmem>>, vector<2x10xf32>,
    return
  }
}

</mosaic_0001>

<bundles_post_ra>
// kernel: model_conv_forward.3
= control target key start
LH: loop header
LB: loop body
LE: loop exit
PB: predicated region body
PF: predicated region fallthrough
CT: control target
= control target key end

     0   :  { %v279_v1 = vmov 0   ;;  %vm86_vm0 = vcmask 1041408   ;;  %vm82_vm1 = vcmask 293888   ;;  %vm187_vm2 = vcmask 64512   ;;  %s357_s0 = inlined_call_operand.vmem [shape: bf16[36,392], index: 0, kind: input, shape index: {}]   ;;  %s358_s2 = inlined_call_operand.vmem [shape: f32[8,3], index: 2, kind: input, shape index: {}]   ;;  %s359_s1 = inlined_call_operand.vmem [shape: bf16[8,36], index: 1, kind: input, shape index: {}]   ;;  %s360_s3 = inlined_call_operand.vmem [shape: f32[8,392], index: 3, kind: output, shape index: {}]  }
   0x1   :  { %v261_v0 = vld [vmem:[%s357_s0 + $0x4] ss:$16 sps:$4 sm:$0xff]   ;;  %131 = vmatprep.mubr.bf16.mxu0 %v279_v1  ;;  %172 = vmatprep.mubr.bf16.mxu1 %v279_v1  ;;  %v263_v2 = vld [vmem:[%s357_s0 + $0xc] ss:$16 sps:$4 sm:$0xff]   ;;  %v265_v3 = vld [vmem:[%s357_s0] ss:$16 sps:$4 sm:$0xff]  }
   0x2   :  { %257 = vset.pattern.permute.xlu0 %v279_v1  ;;  %99 = vmatprep.subr.bf16.mxu0 %v261_v0  ;;  %v266_v4 = vld [vmem:[%s357_s0 + $0x8] ss:$16 sps:$4 sm:$0xff]   ;;  %v267_v5 = vld [vmem:[%s357_s0 + $0x24] ss:$16 sps:$4 sm:$0xff]   ;;  %v269_v6 = vld [vmem:[%s357_s0 + $0x2c] ss:$16 sps:$4 sm:$0xff]  }
   0x3   :  { %140 = vmatprep.subr.bf16.mxu1 %v263_v2  ;;  %100 = vmatpush1.bf16.msra.mxu0 %v265_v3  ;;  %v271_v7 = vld [vmem:[%s357_s0 + $0x20] ss:$16 sps:$4 sm:$0xff]   ;;  %v272_v8 = vld [vmem:[%s357_s0 + $0x28] ss:$16 sps:$4 sm:$0xff]   ;;  %v280_v48 = vmov 1   ;;  %v281_v49 = vmov 2  }
   0x4   :  { %141 = vmatpush1.bf16.msra.mxu1 %v266_v4  ;;  %101 = vmatprep.subr.bf16.mxu0 %v267_v5  ;;  %v24_v9 = vld [vmem:[%s357_s0 + $0x40] sm:$0x33]  ;;  %v25_v10 = vld [vmem:[%s357_s0 + $0x48] sm:$0x33] }
   0x5   :  { %142 = vmatprep.subr.bf16.mxu1 %v269_v6  ;;  %v247_v11 = vcombine.high %v24_v9, %v24_v9  ;;  %v249_v12 = vcombine.high %v25_v10, %v25_v10  ;;  %v246_v13 = vcombine.low %v24_v9, %v24_v9  ;;  %v248_v14 = vcombine.low %v25_v10, %v25_v10  ;;  %v26_v15 = vld [vmem:[%s358_s2] sm:$0xff] }
   0x6   :  { %29 = vperm.xlu0 %257, %v26_v15   ;;  %v15_v18 = vld [vmem:[%s359_s1] sm:$0xf]  ;;  %258 = vset.pattern.permute.xlu1 %v280_v48 }
   0x7   :  { %102 = vmatpush1.bf16.msra.mxu0 %v271_v7  ;;  %v88_v16 = vsel %vm86_vm0, %v246_v13, 0  ;;  %v94_v17 = vsel %vm86_vm0, %v248_v14, 0 }
   0x8   :  { %143 = vmatpush1.bf16.msra.mxu1 %v272_v8  ;;  %250 = vmatprep.subr.msk.bf16.mxu0 %vm86_vm0, %v247_v11 }
   0x9   :  { %252 = vmatprep.subr.msk.bf16.mxu1 %vm86_vm0, %v249_v12 }
   0xa   :  { %260 = vset.pattern.permute.xlu0 %v281_v49 }
   0xb   :  { %104 = vmatpush1.bf16.msra.mxu0 %v88_v16 }
   0xc   :  { %145 = vmatpush1.bf16.msra.mxu1 %v94_v17 }
   0xe   :  { %251 = vmatmul.mubr.msk.bf16.vlgmr.msra.gmra.mrb[0].mxu0 %vm82_vm1, %v15_v18 }
   0xf   :  { %253 = vmatmul.mubr.msk.bf16.vlgmr.msra.gmra.mrb[0].mxu1 %vm82_vm1, %v15_v18 }
  0x85   :  { %v30_v19 = vpop.permute.xlu0 %29 }
  0xe1   :  { %v133_v20 = vpop.f32.mrb[0].mxu0 }
  0xe2   :  { %v174_v21 = vpop.f32.mrb[0].mxu1  ;;  %v134_v22 = vadd.f32 %v133_v20, %v30_v19  ;;  %v135_v24 = vpop.f32.mrb[1].mxu0 }
  0xe3   :  { %v175_v23 = vadd.f32 %v174_v21, %v30_v19  ;;  %v176_v25 = vpop.f32.mrb[1].mxu1  ;;  %v136_v26 = vadd.f32 %v135_v24, %v30_v19  ;;  %v137_v28 = vpop.f32.mrb[2].mxu0 }
  0xe4   :  { %v177_v27 = vadd.f32 %v176_v25, %v30_v19  ;;  %v178_v29 = vpop.f32.mrb[2].mxu1  ;;  %v181_v30 = vmax.f32 %v134_v22, 0.0  ;;  %v138_v31 = vpop.f32.mrb[3].mxu0 }
  0xe5   :  { %v179_v32 = vpop.f32.mrb[3].mxu1  ;;  %v183_v33 = vmax.f32 %v175_v23, 0.0  ;;  %v182_v34 = vmax.f32 %v136_v26, 0.0 }
  0xe6   :  { %v184_v35 = vmax.f32 %v177_v27, 0.0  ;;  %v193_v36 = vmul.f32 %v181_v30, %v181_v30 }
  0xe7   :  { %v194_v37 = vmul.f32 %v182_v34, %v182_v34  ;;  %v185_v38 = vadd.f32 %v182_v34, %v181_v30  ;;  %v195_v41 = vmul.f32 %v183_v33, %v183_v33 }
  0xe8   :  { %v196_v39 = vmul.f32 %v184_v35, %v184_v35  ;;  %v188_v43 = vsel %vm187_vm2, %v184_v35, 0.0 }
  0xe9   :  { %v186_v40 = vadd.f32 %v185_v38, %v183_v33  ;;  %v197_v42 = vadd.f32 %v194_v37, %v193_v36 }
  0xea   :  { %v199_v46 = vsel %vm187_vm2, %v196_v39, 0.0 }
  0xeb   :  { %v189_v44 = vadd.f32 %v188_v43, %v186_v40  ;;  %v198_v45 = vadd.f32 %v197_v42, %v195_v41 }
  0xed   :  { %190 = vadd.xlane.f32.xlu0 %v189_v44  ;;  %v200_v47 = vadd.f32 %v199_v46, %v198_v45 }
  0xef   :  { %201 = vadd.xlane.f32.xlu1 %v200_v47 }
 0x17a   :  { %v191_v50 = vpop.xlane.xlu0 %190 }
 0x17b   :  { %v192_v51 = vmul.f32 0.0025510204, %v191_v50 }
 0x17c   :  { %v202_v52 = vpop.xlane.xlu1 %201 }
 0x17d   :  { %v203_v53 = vmul.f32 0.0025510204, %v202_v52  ;;  %v204_v54 = vmul.f32 %v192_v51, %v192_v51  ;;  %v208_v60 = vsub.f32 %v181_v30, %v192_v51  ;;  %v209_v61 = vsub.f32 %v182_v34, %v192_v51 }
 0x17e   :  { %v210_v62 = vsub.f32 %v183_v33, %v192_v51  ;;  %v211_v63 = vsub.f32 %v184_v35, %v192_v51 }
 0x17f   :  { %v205_v55 = vsub.f32 %v203_v53, %v204_v54 }
 0x181   :  { %v206_v56 = vadd.f32 1e-05, %v205_v55 }
 0x183   :  { %277 = vrsqrt.f32 %v206_v56 }
 0x18d   :  { %v278_v57 = vpop.eup %277 }
 0x18e   :  { %v212_v58 = vmul.f32 %v278_v57, %v26_v15 }
 0x190   :  { %215 = vperm.xlu1 %258, %v212_v58  }
 0x194   :  { %259 = vset.pattern.permute.xlu1 %v281_v49 }
 0x195   :  { %223 = vperm.xlu1 %259, %v26_v15  }
 0x20f   :  { %v216_v59 = vpop.permute.xlu1 %215 }
 0x210   :  { %v218_v0 = vmul.f32 %v216_v59, %v208_v60  ;;  %v219_v1 = vmul.f32 %v216_v59, %v209_v61  ;;  %v220_v2 = vmul.f32 %v216_v59, %v210_v62  ;;  %v221_v3 = vmul.f32 %v216_v59, %v211_v63 }
 0x214   :  { %v224_v4 = vpop.permute.xlu1 %223 }
 0x215   :  { %v226_v5 = vadd.f32 %v224_v4, %v218_v0  ;;  %v227_v6 = vadd.f32 %v224_v4, %v219_v1  ;;  %v228_v7 = vadd.f32 %v224_v4, %v220_v2  ;;  %v229_v8 = vadd.f32 %v224_v4, %v221_v3 }
 0x217   :  { %230 = vst [vmem:[%s360_s3] sm:$0xff] %v226_v5  ;;  %231 = vst [vmem:[%s360_s3 + $0x8] sm:$0xff] %v227_v6 }
 0x218   :  { %232 = vst [vmem:[%s360_s3 + $0x10] sm:$0xff] %v228_v7  ;;  %233 = vst.msk [vmem:[%s360_s3 + $0x18] sm:$0xff] %vm187_vm2, %v229_v8 }

// kernel: model_conv_forward.4
= control target key start
LH: loop header
LB: loop body
LE: loop exit
PB: predicated region body
PF: predicated region fallthrough
CT: control target
= control target key end

     0   :  { %v388_v0 = vmov 0.0   ;;  %vm389_vm0 = vmmov 0   ;;  %v390_v3 = vmov 0   ;;  %vm128_vm1 = vcmask 1043456   ;;  %s534_s0 = inlined_call_operand.vmem [shape: bf16[72,288], index: 0, kind: input, shape index: {}]   ;;  %s535_s2 = inlined_call_operand.vmem [shape: f32[16,3], index: 2, kind: input, shape index: {}]   ;;  %s536_s1 = inlined_call_operand.vmem [shape: bf16[16,72], index: 1, kind: input, shape index: {}]   ;;  %s537_s3 = inlined_call_operand.vmem [shape: f32[16,288], index: 3, kind: output, shape index: {}]  }
   0x1   :  { %340 = vmatprep.subr.bf16.mxu1 %v388_v0  ;;  %v364_v1 = vld [vmem:[%s534_s0 + $0x4] ss:$12 sps:$4 sm:$0xff]   ;;  %350 = vmatprep.mubr.msk.bf16.mxu1 %vm389_vm0, %v388_v0  ;;  %v366_v2 = vld [vmem:[%s534_s0 + $0x8] ss:$12 sps:$4 sm:$0xff]   ;;  %v367_v4 = vld [vmem:[%s534_s0] ss:$12 sps:$4 sm:$0xff]  }
   0x2   :  { %170 = vmatprep.mubr.bf16.mxu0 %v390_v3  ;;  %359 = vset.pattern.permute.xlu0 %v390_v3  ;;  %v368_v5 = vld [vmem:[%s534_s0 + $0x1c] ss:$12 sps:$4 sm:$0xff]   ;;  %v370_v6 = vld [vmem:[%s534_s0 + $0x20] ss:$12 sps:$4 sm:$0xff]   ;;  %v371_v7 = vld [vmem:[%s534_s0 + $0x18] ss:$12 sps:$4 sm:$0xff]  }
   0x3   :  { %138 = vmatprep.subr.bf16.mxu0 %v364_v1  ;;  %341 = vmatpush3.bf16.msra.mxu1 %v366_v2  ;;  %v372_v8 = vld [vmem:[%s534_s0 + $0x34] ss:$12 sps:$4 sm:$0xff]   ;;  %v374_v9 = vld [vmem:[%s534_s0 + $0x38] ss:$12 sps:$4 sm:$0xff]   ;;  %v375_v10 = vld [vmem:[%s534_s0 + $0x30] ss:$12 sps:$4 sm:$0xff]  }
   0x4   :  { %139 = vmatpush1.bf16.msra.mxu0 %v367_v4  ;;  %342 = vmatprep.subr.bf16.mxu1 %v388_v0  ;;  %v376_v11 = vld [vmem:[%s534_s0 + $0x4c] ss:$12 sps:$4 sm:$0xff]   ;;  %v33_v12 = vld [vmem:[%s534_s0 + $0x60] sm:$0xff]  ;;  %v378_v13 = vld [vmem:[%s534_s0 + $0x50] ss:$12 sps:$4 sm:$0xff]   ;;  %vm124_vm2 = vcmask 588800  }
   0x5   :  { %140 = vmatprep.subr.bf16.mxu0 %v368_v5  ;;  %v452_v14 = vld [vmem:[%s535_s2] sm:$0xff]  ;;  %v379_v15 = vld [vmem:[%s534_s0 + $0x48] ss:$12 sps:$4 sm:$0xff]   ;;  %v329_v17 = vcombine.high %v33_v12, %v33_v12  ;;  %v328_v18 = vcombine.low %v33_v12, %v33_v12  ;;  %vm229_vm3 = vcmask 261120   ;;  %v391_v63 = vmov 2  }
   0x6   :  { %v381_v16 = vld [vmem:[%s534_s0 + $0x68] ss:$0 sps:$4 sm:$0xff]   ;;  %39 = vperm.xlu0 %359, %v452_v14   ;;  %v383_v22 = vld [vmem:[%s536_s1] sm:$0xff]   ;;  %360 = vset.pattern.permute.xlu1 %v391_v63 }
   0x7   :  { %343 = vmatpush3.bf16.msra.mxu1 %v370_v6  ;;  %v464_v19 = vld [vmem:[%s535_s2 + $0x8] sm:$0xff]  ;;  %v136_v20 = vsel %vm128_vm1, %v381_v16, 0  ;;  %v130_v21 = vsel %vm128_vm1, %v328_v18, 0 }
   0x8   :  { %141 = vmatpush1.bf16.msra.mxu0 %v371_v7  ;;  %344 = vmatprep.subr.bf16.mxu1 %v388_v0 }
   0x9   :  { %142 = vmatprep.subr.bf16.mxu0 %v372_v8 }
   0xa   :  { %44 = vperm.xlu0 %359, %v464_v19  }
   0xb   :  { %345 = vmatpush3.bf16.msra.mxu1 %v374_v9 }
   0xc   :  { %143 = vmatpush1.bf16.msra.mxu0 %v375_v10  ;;  %346 = vmatprep.subr.bf16.mxu1 %v388_v0 }
   0xd   :  { %144 = vmatprep.subr.bf16.mxu0 %v376_v11 }
   0xe   :  { %363 = vset.pattern.permute.xlu0 %v391_v63 }
   0xf   :  { %347 = vmatpush3.bf16.msra.mxu1 %v378_v13 }
  0x10   :  { %145 = vmatpush1.bf16.msra.mxu0 %v379_v15  ;;  %348 = vmatprep.subr.bf16.mxu1 %v388_v0  ;;  %v392_v0 = vmov 1  }
  0x11   :  { %331 = vmatprep.subr.msk.bf16.mxu0 %vm128_vm1, %v329_v17 }
  0x13   :  { %349 = vmatpush3.bf16.msra.mxu1 %v136_v20 }
  0x14   :  { %147 = vmatpush1.bf16.msra.mxu0 %v130_v21 }
  0x16   :  { %351 = vmatmul.mubr.msk.bf16.vlgmr.msra.gmra.mrb[0].mxu1 %vm124_vm2, %v383_v22 }
  0x17   :  { %332 = vmatmul.mubr.msk.bf16.vlgmr.msra.gmra.mrb[0].mxu0 %vm124_vm2, %v383_v22 }
  0x85   :  { %v40_v23 = vpop.permute.xlu0 %39 }
  0x89   :  { %v45_v25 = vpop.permute.xlu0 %44 }
  0xe9   :  { %v215_v24 = vpop.f32.mrb[0].mxu1 }
  0xea   :  { %v216_v26 = vadd.f32 %v215_v24, %v40_v23  ;;  %v172_v27 = vpop.f32.mrb[0].mxu0  ;;  %v352_v28 = vpop.f32.mrb[1].mxu1 }
  0xeb   :  { %v173_v29 = vadd.f32 %v172_v27, %v40_v23  ;;  %v174_v30 = vpop.f32.mrb[1].mxu0  ;;  %v218_v31 = vpop.f32.mrb[2].mxu1 }
  0xec   :  { %v470_v32 = vmax.f32 %v216_v26, 0.0  ;;  %v175_v33 = vadd.f32 %v174_v30, %v40_v23  ;;  %v176_v34 = vpop.f32.mrb[2].mxu0  ;;  %v353_v35 = vpop.f32.mrb[3].mxu1  ;;  %v219_v37 = vadd.f32 %v218_v31, %v45_v25 }
  0xed   :  { %v472_v36 = vmax.f32 %v173_v29, 0.0  ;;  %v177_v38 = vadd.f32 %v176_v34, %v45_v25  ;;  %v178_v39 = vpop.f32.mrb[3].mxu0 }
  0xee   :  { %v474_v40 = vmax.f32 %v175_v33, 0.0  ;;  %v179_v41 = vadd.f32 %v178_v39, %v45_v25  ;;  %v230_v43 = vsel %vm229_vm3, %v470_v32, 0.0  ;;  %v243_v45 = vmul.f32 %v470_v32, %v470_v32 }
  0xef   :  { %v476_v42 = vmax.f32 %v177_v38, 0.0  ;;  %v241_v44 = vmul.f32 %v472_v36, %v472_v36  ;;  %v490_v49 = vmax.f32 %v219_v37, 0.0 }
  0xf0   :  { %v484_v46 = vmax.f32 %v179_v41, 0.0  ;;  %v228_v47 = vadd.f32 %v474_v40, %v472_v36  ;;  %v242_v48 = vmul.f32 %v474_v40, %v474_v40  ;;  %v248_v50 = vsel %vm229_vm3, %v243_v45, 0.0 }
  0xf1   :  { %v244_v51 = vmul.f32 %v476_v42, %v476_v42  ;;  %v235_v57 = vsel %vm229_vm3, %v490_v49, 0.0  ;;  %v246_v58 = vmul.f32 %v490_v49, %v490_v49 }
  0xf2   :  { %v231_v52 = vadd.f32 %v230_v43, %v228_v47  ;;  %v247_v53 = vadd.f32 %v242_v48, %v241_v44  ;;  %v234_v54 = vadd.f32 %v484_v46, %v476_v42  ;;  %v245_v55 = vmul.f32 %v484_v46, %v484_v46 }
  0xf3   :  { %v253_v61 = vsel %vm229_vm3, %v246_v58, 0.0 }
  0xf4   :  { %232 = vadd.xlane.f32.xlu1 %v231_v52  ;;  %v249_v56 = vadd.f32 %v248_v50, %v247_v53  ;;  %v236_v59 = vadd.f32 %v235_v57, %v234_v54  ;;  %v252_v60 = vadd.f32 %v245_v55, %v244_v51 }
  0xf6   :  { %250 = vadd.xlane.f32.xlu0 %v249_v56  ;;  %v254_v62 = vadd.f32 %v253_v61, %v252_v60 }
  0xf8   :  { %237 = vadd.xlane.f32.xlu1 %v236_v59 }
  0xfc   :  { %255 = vadd.xlane.f32.xlu1 %v254_v62 }
 0x10d   :  { %292 = vperm.xlu1 %360, %v452_v14  }
 0x111   :  { %361 = vset.pattern.permute.xlu1 %v392_v0 }
 0x181   :  { %v233_v1 = vpop.xlane.xlu1 %232 }
 0x182   :  { %v239_v2 = vmul.f32 0.0034722222, %v233_v1 }
 0x183   :  { %v251_v3 = vpop.xlane.xlu0 %250 }
 0x184   :  { %v257_v4 = vmul.f32 0.0034722222, %v251_v3  ;;  %v259_v5 = vmul.f32 %v239_v2, %v239_v2  ;;  %v267_v22 = vsub.f32 %v472_v36, %v239_v2  ;;  %v268_v23 = vsub.f32 %v474_v40, %v239_v2 }
 0x185   :  { %v238_v6 = vpop.xlane.xlu1 %237  ;;  %v269_v24 = vsub.f32 %v470_v32, %v239_v2 }
 0x186   :  { %v261_v7 = vsub.f32 %v257_v4, %v259_v5  ;;  %v240_v8 = vmul.f32 0.0034722222, %v238_v6 }
 0x188   :  { %v263_v9 = vadd.f32 1e-05, %v261_v7  ;;  %v260_v11 = vmul.f32 %v240_v8, %v240_v8  ;;  %v270_v31 = vsub.f32 %v476_v42, %v240_v8  ;;  %v271_v32 = vsub.f32 %v484_v46, %v240_v8 }
 0x189   :  { %v256_v10 = vpop.xlane.xlu1 %255  ;;  %v272_v33 = vsub.f32 %v490_v49, %v240_v8 }
 0x18a   :  { %384 = vrsqrt.f32 %v263_v9  ;;  %v258_v12 = vmul.f32 0.0034722222, %v256_v10 }
 0x18c   :  { %v262_v13 = vsub.f32 %v258_v12, %v260_v11 }
 0x18d   :  { %v293_v21 = vpop.permute.xlu1 %292 }
 0x18e   :  { %v264_v15 = vadd.f32 1e-05, %v262_v13 }
 0x190   :  { %386 = vrsqrt.f32 %v264_v15 }
 0x194   :  { %v385_v16 = vpop.eup %384 }
 0x195   :  { %v273_v17 = vmul.f32 %v385_v16, %v452_v14 }
 0x197   :  { %277 = vperm.xlu1 %361, %v273_v17  }
 0x19a   :  { %v387_v18 = vpop.eup %386 }
 0x19b   :  { %v274_v20 = vmul.f32 %v387_v18, %v464_v19 }
 0x19d   :  { %282 = vperm.xlu1 %361, %v274_v20  }
 0x1a1   :  { %362 = vset.pattern.permute.xlu1 %v391_v63 }
 0x1a2   :  { %296 = vperm.xlu1 %362, %v464_v19  }
 0x216   :  { %v278_v25 = vpop.permute.xlu1 %277 }
 0x217   :  { %v285_v26 = vmul.f32 %v278_v25, %v267_v22  ;;  %v286_v27 = vmul.f32 %v278_v25, %v268_v23  ;;  %v287_v28 = vmul.f32 %v278_v25, %v269_v24 }
 0x219   :  { %v299_v14 = vadd.f32 %v293_v21, %v285_v26  ;;  %v300_v29 = vadd.f32 %v293_v21, %v286_v27  ;;  %v301_v30 = vadd.f32 %v293_v21, %v287_v28 }
 0x21b   :  { %305 = vst [vmem:[%s537_s3] sm:$0xff] %v299_v14  ;;  %306 = vst [vmem:[%s537_s3 + $0x8] sm:$0xff] %v300_v29 }
 0x21c   :  { %307 = vst.msk [vmem:[%s537_s3 + $0x10] sm:$0xff] %vm229_vm3, %v301_v30  ;;  %v283_v19 = vpop.permute.xlu1 %282 }
 0x21d   :  { %v288_v34 = vmul.f32 %v283_v19, %v270_v31  ;;  %v289_v35 = vmul.f32 %v283_v19, %v271_v32  ;;  %v290_v36 = vmul.f32 %v283_v19, %v272_v33 }
 0x221   :  { %v297_v37 = vpop.permute.xlu1 %296 }
 0x222   :  { %v302_v38 = vadd.f32 %v297_v37, %v288_v34  ;;  %v303_v39 = vadd.f32 %v297_v37, %v289_v35  ;;  %v304_v40 = vadd.f32 %v297_v37, %v290_v36 }
 0x224   :  { %308 = vst [vmem:[%s537_s3 + $0x18] sm:$0xff] %v302_v38  ;;  %309 = vst [vmem:[%s537_s3 + $0x20] sm:$0xff] %v303_v39 }
 0x225   :  { %310 = vst.msk [vmem:[%s537_s3 + $0x28] sm:$0xff] %vm229_vm3, %v304_v40 }

// kernel: model_conv_forward.5
= control target key start
LH: loop header
LB: loop body
LE: loop exit
PB: predicated region body
PF: predicated region fallthrough
CT: control target
= control target key end

     0   :  { %v321_v27 = vlaneseq  ;;  %v2211_v35 = vmov 1966171168   ;;  %s2715_s0 = inlined_call_operand.vmem [shape: bf16[2,2304], index: 0, kind: input, shape index: {}]   ;;  %s2716_s1 = inlined_call_operand.vmem [shape: bf16[2304,10], index: 1, kind: input, shape index: {}]   ;;  %s2717_s2 = inlined_call_operand.vmem [shape: f32[1,10], index: 2, kind: input, shape index: {}]   ;;  %s2718_s3 = inlined_call_operand.hbm [shape: f32[2,10], index: 3, kind: output, shape index: {}]  }
   0x1   :  { %v2041_v0 = vld [vmem:[%s2716_s1 + $0x40] sm:$0xff]   ;;  %v2045_v4 = vld [vmem:[%s2716_s1 + $0x48] sm:$0xff]   ;;  %v2049_v8 = vld [vmem:[%s2716_s1 + $0x50] sm:$0xff]   ;;  %v319_v36 = vunpack.c.l.s4 %v2211_v35 }
   0x2   :  { %v2042_v1 = vld [vmem:[%s2716_s1] sm:$0xff]   ;;  %1841 = vmatprep.subr.bf16.mxu0 %v2041_v0  ;;  %v2046_v5 = vld [vmem:[%s2716_s1 + $0x8] sm:$0xff]   ;;  %v2050_v9 = vld [vmem:[%s2716_s1 + $0x10] sm:$0xff]   ;;  %v322_v32 = vshrl.u32 %v321_v27, 7 }
   0x3   :  { %v2043_v2 = vld [vmem:[%s2716_s1 + $0xc0] sm:$0xff]   ;;  %1842 = vmatpush3.bf16.msra.mxu0 %v2042_v1  ;;  %v2047_v6 = vld [vmem:[%s2716_s1 + $0xc8] sm:$0xff]   ;;  %v2051_v10 = vld [vmem:[%s2716_s1 + $0xd0] sm:$0xff]   ;;  %v320_v39 = vunpack.c.0.s8 %v319_v36 }
   0x4   :  { %v2044_v3 = vld [vmem:[%s2716_s1 + $0x80] sm:$0xff]   ;;  %1863 = vmatprep.subr.bf16.mxu1 %v2043_v2  ;;  %1843 = vmatprep.subr.bf16.mxu0 %v2045_v4  ;;  %v2048_v7 = vld [vmem:[%s2716_s1 + $0x88] sm:$0xff]   ;;  %v2052_v11 = vld [vmem:[%s2716_s1 + $0x90] sm:$0xff]  }
   0x5   :  { %1864 = vmatpush3.bf16.msra.mxu1 %v2044_v3  ;;  %v2053_v12 = vld [vmem:[%s2716_s1 + $0x58] sm:$0xff]   ;;  %v2057_v16 = vld [vmem:[%s2716_s1 + $0x60] sm:$0xff]   ;;  %v2061_v20 = vld [vmem:[%s2716_s1 + $0x68] sm:$0xff]   ;;  %v2338_v41 = vsub.s32 %v320_v39, %v322_v32 }
   0x6   :  { %1865 = vmatprep.subr.bf16.mxu1 %v2047_v6  ;;  %v2054_v13 = vld [vmem:[%s2716_s1 + $0x18] sm:$0xff]   ;;  %v2058_v17 = vld [vmem:[%s2716_s1 + $0x20] sm:$0xff]   ;;  %v2062_v21 = vld [vmem:[%s2716_s1 + $0x28] sm:$0xff]  }
   0x7   :  { %1844 = vmatpush3.bf16.msra.mxu0 %v2046_v5  ;;  %v2055_v14 = vld [vmem:[%s2716_s1 + $0xd8] sm:$0xff]   ;;  %v2059_v18 = vld [vmem:[%s2716_s1 + $0xe0] sm:$0xff]   ;;  %v2063_v22 = vld [vmem:[%s2716_s1 + $0xe8] sm:$0xff]  }
   0x8   :  { %1845 = vmatprep.subr.bf16.mxu0 %v2049_v8  ;;  %v2056_v15 = vld [vmem:[%s2716_s1 + $0x98] sm:$0xff]   ;;  %v2060_v19 = vld [vmem:[%s2716_s1 + $0xa0] sm:$0xff]   ;;  %v2064_v23 = vld [vmem:[%s2716_s1 + $0xa8] sm:$0xff]  }
   0x9   :  { %1866 = vmatpush3.bf16.msra.mxu1 %v2048_v7  ;;  %v2065_v24 = vld [vmem:[%s2716_s1 + $0x70] sm:$0xff]   ;;  %v2069_v29 = vld [vmem:[%s2716_s1 + $0x78] sm:$0xff]   ;;  %v16_v33 = vld [vmem:[%s2715_s0] sm:$0xff] }
   0xa   :  { %1867 = vmatprep.subr.bf16.mxu1 %v2051_v10  ;;  %v2066_v25 = vld [vmem:[%s2716_s1 + $0x30] sm:$0xff]   ;;  %v2070_v30 = vld [vmem:[%s2716_s1 + $0x38] sm:$0xff]   ;;  %v2074_v37 = vld [vmem:[%s2716_s1 + $0x140] sm:$0xff]   ;;  %v317_v38 = vcombine.high %v16_v33, %v16_v33  ;;  %v324_v42 = vrot.slane %v16_v33, %v2338_v41 }
   0xb   :  { %1846 = vmatpush3.bf16.msra.mxu0 %v2050_v9  ;;  %v2067_v26 = vld [vmem:[%s2716_s1 + $0xf0] sm:$0xff]   ;;  %v2071_v31 = vld [vmem:[%s2716_s1 + $0xf8] sm:$0xff]   ;;  %v2076_v40 = vld [vmem:[%s2716_s1 + $0x1c0] sm:$0xff]  }
   0xc   :  { %1847 = vmatprep.subr.bf16.mxu0 %v2053_v12  ;;  %v2068_v28 = vld [vmem:[%s2716_s1 + $0xb0] sm:$0xff]   ;;  %v2073_v34 = vld [vmem:[%s2716_s1 + $0xb8] sm:$0xff]   ;;  %v2342_v43 = vrot.slane %v317_v38, %v2338_v41  ;;  %v332_v44 = vcombine.high %v324_v42, %v324_v42  ;;  %v340_v45 = vrot.slane %v324_v42, %v2338_v41  ;;  %v2075_v48 = vld [vmem:[%s2716_s1 + $0x100] sm:$0xff]  }
   0xd   :  { %1868 = vmatpush3.bf16.msra.mxu1 %v2052_v11  ;;  %v2078_v51 = vld [vmem:[%s2716_s1 + $0x148] sm:$0xff]   ;;  %v2077_v53 = vld [vmem:[%s2716_s1 + $0x180] sm:$0xff]   ;;  %v2082_v57 = vld [vmem:[%s2716_s1 + $0x150] sm:$0xff]  }
   0xe   :  { %1869 = vmatprep.subr.bf16.mxu1 %v2055_v14  ;;  %v333_v46 = vcombine.high %v2342_v43, %v2342_v43  ;;  %v354_v47 = vrot.slane %v332_v44, %v2338_v41  ;;  %v362_v50 = vcombine.high %v340_v45, %v340_v45  ;;  %v2080_v54 = vld [vmem:[%s2716_s1 + $0x1c8] sm:$0xff]   ;;  %v2084_v59 = vld [vmem:[%s2716_s1 + $0x1d0] sm:$0xff]   ;;  %v2086_v61 = vld [vmem:[%s2716_s1 + $0x158] sm:$0xff]  }
   0xf   :  { %1848 = vmatpush3.bf16.msra.mxu0 %v2054_v13  ;;  %v2079_v56 = vld [vmem:[%s2716_s1 + $0x108] sm:$0xff]   ;;  %v2083_v60 = vld [vmem:[%s2716_s1 + $0x110] sm:$0xff]   ;;  %v2088_v63 = vld [vmem:[%s2716_s1 + $0x1d8] sm:$0xff]  }
  0x10   :  { %1849 = vmatprep.subr.bf16.mxu0 %v2057_v16  ;;  %v361_v49 = vrot.slane %v333_v46, %v2338_v41  ;;  %1351 = vmatprep.mubr.bf16.mxu0 %v354_v47  ;;  %v364_v52 = vcombine.high %v354_v47, %v354_v47  ;;  %v2081_v58 = vld [vmem:[%s2716_s1 + $0x188] sm:$0xff]   ;;  %v2085_v62 = vld [vmem:[%s2716_s1 + $0x190] sm:$0xff]   ;;  %v2087_v0 = vld [vmem:[%s2716_s1 + $0x118] sm:$0xff]  }
  0x11   :  { %1870 = vmatpush3.bf16.msra.mxu1 %v2056_v15  ;;  %v2090_v1 = vld [vmem:[%s2716_s1 + $0x160] sm:$0xff]   ;;  %v2089_v2 = vld [vmem:[%s2716_s1 + $0x198] sm:$0xff]   ;;  %v2094_v5 = vld [vmem:[%s2716_s1 + $0x168] sm:$0xff]  }
  0x12   :  { %1871 = vmatprep.subr.bf16.mxu1 %v2059_v18  ;;  %v365_v55 = vcombine.high %v361_v49, %v361_v49  ;;  %1391 = vmatprep.mubr.bf16.mxu1 %v364_v52  ;;  %v2092_v3 = vld [vmem:[%s2716_s1 + $0x1e0] sm:$0xff]   ;;  %v2096_v7 = vld [vmem:[%s2716_s1 + $0x1e8] sm:$0xff]   ;;  %v2098_v9 = vld [vmem:[%s2716_s1 + $0x170] sm:$0xff]  }
  0x13   :  { %1850 = vmatpush3.bf16.msra.mxu0 %v2058_v17  ;;  %v2091_v4 = vld [vmem:[%s2716_s1 + $0x120] sm:$0xff]   ;;  %v2095_v8 = vld [vmem:[%s2716_s1 + $0x128] sm:$0xff]   ;;  %v2100_v11 = vld [vmem:[%s2716_s1 + $0x1f0] sm:$0xff]   ;;  %v347_v17 = vrot.slane %v2342_v43, %v2338_v41 }
  0x14   :  { %1851 = vmatprep.subr.bf16.mxu0 %v2061_v20  ;;  %v2093_v6 = vld [vmem:[%s2716_s1 + $0x1a0] sm:$0xff]   ;;  %v2097_v10 = vld [vmem:[%s2716_s1 + $0x1a8] sm:$0xff]   ;;  %v2099_v12 = vld [vmem:[%s2716_s1 + $0x130] sm:$0xff]  }
  0x15   :  { %1872 = vmatpush3.bf16.msra.mxu1 %v2060_v19  ;;  %v2102_v13 = vld [vmem:[%s2716_s1 + $0x178] sm:$0xff]   ;;  %v2101_v14 = vld [vmem:[%s2716_s1 + $0x1b0] sm:$0xff]   ;;  %v2106_v18 = vld [vmem:[%s2716_s1 + $0x240] sm:$0xff]  }
  0x16   :  { %1873 = vmatprep.subr.bf16.mxu1 %v2063_v22  ;;  %v2104_v15 = vld [vmem:[%s2716_s1 + $0x1f8] sm:$0xff]   ;;  %v2108_v20 = vld [vmem:[%s2716_s1 + $0x2c0] sm:$0xff]   ;;  %v363_v22 = vcombine.high %v347_v17, %v347_v17  ;;  %v2114_v27 = vld [vmem:[%s2716_s1 + $0x250] sm:$0xff]  }
  0x17   :  { %1852 = vmatpush3.bf16.msra.mxu0 %v2062_v21  ;;  %v2103_v16 = vld [vmem:[%s2716_s1 + $0x138] sm:$0xff]   ;;  %v2107_v21 = vld [vmem:[%s2716_s1 + $0x200] sm:$0xff]   ;;  %v2117_v32 = vld [vmem:[%s2716_s1 + $0x290] sm:$0xff]  }
  0x18   :  { %1853 = vmatprep.subr.bf16.mxu0 %v2065_v24  ;;  %v2105_v19 = vld [vmem:[%s2716_s1 + $0x1b8] sm:$0xff]   ;;  %v2109_v24 = vld [vmem:[%s2716_s1 + $0x280] sm:$0xff]   ;;  %v2126_v39 = vld [vmem:[%s2716_s1 + $0x268] sm:$0xff]  }
  0x19   :  { %1874 = vmatpush3.bf16.msra.mxu1 %v2064_v23  ;;  %v2110_v23 = vld [vmem:[%s2716_s1 + $0x248] sm:$0xff]   ;;  %v2120_v33 = vld [vmem:[%s2716_s1 + $0x2d8] sm:$0xff]   ;;  %v2122_v35 = vld [vmem:[%s2716_s1 + $0x260] sm:$0xff]  }
  0x1a   :  { %1875 = vmatprep.subr.bf16.mxu1 %v2067_v26  ;;  %v2111_v26 = vld [vmem:[%s2716_s1 + $0x208] sm:$0xff]   ;;  %v2121_v36 = vld [vmem:[%s2716_s1 + $0x298] sm:$0xff]   ;;  %v2123_v38 = vld [vmem:[%s2716_s1 + $0x220] sm:$0xff]  }
  0x1b   :  { %1854 = vmatpush3.bf16.msra.mxu0 %v2066_v25  ;;  %v2112_v25 = vld [vmem:[%s2716_s1 + $0x2c8] sm:$0xff]   ;;  %v2130_v44 = vld [vmem:[%s2716_s1 + $0x270] sm:$0xff]  }
  0x1c   :  { %1855 = vmatprep.subr.bf16.mxu0 %v2069_v29  ;;  %v2116_v29 = vld [vmem:[%s2716_s1 + $0x2d0] sm:$0xff]   ;;  %v2128_v42 = vld [vmem:[%s2716_s1 + $0x2e8] sm:$0xff]  }
  0x1d   :  { %1876 = vmatpush3.bf16.msra.mxu1 %v2068_v28  ;;  %v2113_v28 = vld [vmem:[%s2716_s1 + $0x288] sm:$0xff]  }
  0x1e   :  { %1877 = vmatprep.subr.bf16.mxu1 %v2071_v31  ;;  %v2118_v31 = vld [vmem:[%s2716_s1 + $0x258] sm:$0xff]   ;;  %v2127_v43 = vld [vmem:[%s2716_s1 + $0x228] sm:$0xff]  }
  0x1f   :  { %1856 = vmatpush3.bf16.msra.mxu0 %v2070_v30  ;;  %v2115_v30 = vld [vmem:[%s2716_s1 + $0x210] sm:$0xff]   ;;  %v2129_v46 = vld [vmem:[%s2716_s1 + $0x2a8] sm:$0xff]  }
  0x20   :  { %1885 = vmatprep.subr.bf16.mxu0 %v2074_v37  ;;  %v2124_v37 = vld [vmem:[%s2716_s1 + $0x2e0] sm:$0xff]  }
  0x21   :  { %1878 = vmatpush3.bf16.msra.mxu1 %v2073_v34  ;;  %v2119_v34 = vld [vmem:[%s2716_s1 + $0x218] sm:$0xff]  }
  0x22   :  { %1907 = vmatprep.subr.bf16.mxu1 %v2076_v40  ;;  %1352 = vmatmul.mubr.bf16.vlgmr.msra.gmra.mrb[0].mxu0 %v340_v45  ;;  %v2125_v40 = vld [vmem:[%s2716_s1 + $0x2a0] sm:$0xff]   ;;  %v17_v45 = vld [vmem:[%s2715_s0 + $0x8] sm:$0xff] }
  0x23   :  { %1886 = vmatpush3.bf16.msra.mxu0 %v2075_v48  ;;  %1431 = vmatprep.mubr.bf16.mxu0 %v361_v49  ;;  %v373_v47 = vrot.slane %v17_v45, %v2338_v41  ;;  %v366_v48 = vcombine.high %v17_v45, %v17_v45  ;;  %v2132_v49 = vld [vmem:[%s2716_s1 + $0x2f0] sm:$0xff]  }
  0x24   :  { %1392 = vmatmul.mubr.bf16.vlgmr.msra.gmra.mrb[0].mxu1 %v362_v50  ;;  %1887 = vmatprep.subr.bf16.mxu0 %v2078_v51  ;;  %v2131_v50 = vld [vmem:[%s2716_s1 + $0x230] sm:$0xff]  }
  0x25   :  { %1908 = vmatpush3.bf16.msra.mxu1 %v2077_v53  ;;  %1471 = vmatprep.mubr.bf16.mxu1 %v365_v55  ;;  %v381_v51 = vcombine.high %v373_v47, %v373_v47  ;;  %v2527_v52 = vrot.slane %v366_v48, %v2338_v41  ;;  %v2134_v53 = vld [vmem:[%s2716_s1 + $0x278] sm:$0xff]  }
  0x26   :  { %1909 = vmatprep.subr.bf16.mxu1 %v2080_v54  ;;  %v2133_v54 = vld [vmem:[%s2716_s1 + $0x2b0] sm:$0xff]  }
  0x27   :  { %1888 = vmatpush3.bf16.msra.mxu0 %v2079_v56  ;;  %v403_v55 = vrot.slane %v381_v51, %v2338_v41  ;;  %v382_v56 = vcombine.high %v2527_v52, %v2527_v52 }
  0x28   :  { %1889 = vmatprep.subr.bf16.mxu0 %v2082_v57  ;;  %v2136_v57 = vld [vmem:[%s2716_s1 + $0x2f8] sm:$0xff]  }
  0x29   :  { %1910 = vmatpush3.bf16.msra.mxu1 %v2081_v58  ;;  %v2135_v58 = vld [vmem:[%s2716_s1 + $0x238] sm:$0xff]  }
  0x2a   :  { %1911 = vmatprep.subr.bf16.mxu1 %v2084_v59  ;;  %v413_v59 = vcombine.high %v403_v55, %v403_v55 }
  0x2b   :  { %1890 = vmatpush3.bf16.msra.mxu0 %v2083_v60  ;;  %v389_v60 = vrot.slane %v373_v47, %v2338_v41 }
  0x2c   :  { %1891 = vmatprep.subr.bf16.mxu0 %v2086_v61  ;;  %v2138_v61 = vld [vmem:[%s2716_s1 + $0x340] sm:$0xff]  }
  0x2d   :  { %1912 = vmatpush3.bf16.msra.mxu1 %v2085_v62  ;;  %v2137_v62 = vld [vmem:[%s2716_s1 + $0x2b8] sm:$0xff]  }
  0x2e   :  { %1913 = vmatprep.subr.bf16.mxu1 %v2088_v63  ;;  %v410_v63 = vrot.slane %v382_v56, %v2338_v41 }
  0x2f   :  { %1892 = vmatpush3.bf16.msra.mxu0 %v2087_v0  ;;  %v2140_v0 = vld [vmem:[%s2716_s1 + $0x3c0] sm:$0xff]  }
  0x30   :  { %1893 = vmatprep.subr.bf16.mxu0 %v2090_v1  ;;  %v2139_v1 = vld [vmem:[%s2716_s1 + $0x300] sm:$0xff]  }
  0x31   :  { %1914 = vmatpush3.bf16.msra.mxu1 %v2089_v2  ;;  %v411_v2 = vcombine.high %v389_v60, %v389_v60 }
  0x32   :  { %1915 = vmatprep.subr.bf16.mxu1 %v2092_v3  ;;  %v2142_v3 = vld [vmem:[%s2716_s1 + $0x348] sm:$0xff]  }
  0x33   :  { %1894 = vmatpush3.bf16.msra.mxu0 %v2091_v4  ;;  %v2141_v4 = vld [vmem:[%s2716_s1 + $0x380] sm:$0xff]  }
  0x34   :  { %1895 = vmatprep.subr.bf16.mxu0 %v2094_v5  ;;  %v414_v5 = vcombine.high %v410_v63, %v410_v63 }
  0x35   :  { %1916 = vmatpush3.bf16.msra.mxu1 %v2093_v6  ;;  %v2144_v6 = vld [vmem:[%s2716_s1 + $0x3c8] sm:$0xff]  }
  0x36   :  { %1917 = vmatprep.subr.bf16.mxu1 %v2096_v7  ;;  %v2143_v7 = vld [vmem:[%s2716_s1 + $0x308] sm:$0xff]  }
  0x37   :  { %1896 = vmatpush3.bf16.msra.mxu0 %v2095_v8  ;;  %v2146_v8 = vld [vmem:[%s2716_s1 + $0x350] sm:$0xff]  }
  0x38   :  { %1897 = vmatprep.subr.bf16.mxu0 %v2098_v9  ;;  %v2145_v9 = vld [vmem:[%s2716_s1 + $0x388] sm:$0xff]  }
  0x39   :  { %1918 = vmatpush3.bf16.msra.mxu1 %v2097_v10  ;;  %v2148_v10 = vld [vmem:[%s2716_s1 + $0x3d0] sm:$0xff]  }
  0x3a   :  { %1919 = vmatprep.subr.bf16.mxu1 %v2100_v11  ;;  %v2147_v11 = vld [vmem:[%s2716_s1 + $0x310] sm:$0xff]  }
  0x3b   :  { %1898 = vmatpush3.bf16.msra.mxu0 %v2099_v12  ;;  %v2150_v12 = vld [vmem:[%s2716_s1 + $0x358] sm:$0xff]  }
  0x3c   :  { %1899 = vmatprep.subr.bf16.mxu0 %v2102_v13  ;;  %v2149_v13 = vld [vmem:[%s2716_s1 + $0x390] sm:$0xff]  }
  0x3d   :  { %1920 = vmatpush3.bf16.msra.mxu1 %v2101_v14  ;;  %v2152_v14 = vld [vmem:[%s2716_s1 + $0x3d8] sm:$0xff]  }
  0x3e   :  { %1921 = vmatprep.subr.bf16.mxu1 %v2104_v15  ;;  %v2151_v15 = vld [vmem:[%s2716_s1 + $0x318] sm:$0xff]  }
  0x3f   :  { %1900 = vmatpush3.bf16.msra.mxu0 %v2103_v16  ;;  %v2154_v16 = vld [vmem:[%s2716_s1 + $0x360] sm:$0xff]  }
  0x40   :  { %1929 = vmatprep.subr.bf16.mxu0 %v2106_v18  ;;  %v2156_v18 = vld [vmem:[%s2716_s1 + $0x3e0] sm:$0xff]  }
  0x41   :  { %1922 = vmatpush3.bf16.msra.mxu1 %v2105_v19  ;;  %v2155_v19 = vld [vmem:[%s2716_s1 + $0x320] sm:$0xff]  }
  0x42   :  { %1432 = vmatmul.mubr.bf16.vlgmr.msra.gmra.mrb[4].mxu0 %v347_v17  ;;  %1951 = vmatprep.subr.bf16.mxu1 %v2108_v20  ;;  %v2153_v17 = vld [vmem:[%s2716_s1 + $0x398] sm:$0xff]   ;;  %v2158_v20 = vld [vmem:[%s2716_s1 + $0x368] sm:$0xff]  }
  0x43   :  { %1930 = vmatpush3.bf16.msra.mxu0 %v2107_v21  ;;  %1511 = vmatprep.mubr.bf16.mxu0 %v403_v55  ;;  %v2157_v21 = vld [vmem:[%s2716_s1 + $0x3a0] sm:$0xff]  }
  0x44   :  { %1472 = vmatmul.mubr.bf16.vlgmr.msra.gmra.mrb[4].mxu1 %v363_v22  ;;  %1931 = vmatprep.subr.bf16.mxu0 %v2110_v23  ;;  %v2160_v22 = vld [vmem:[%s2716_s1 + $0x3e8] sm:$0xff]  }
  0x45   :  { %1952 = vmatpush3.bf16.msra.mxu1 %v2109_v24  ;;  %1551 = vmatprep.mubr.bf16.mxu1 %v413_v59  ;;  %v2159_v23 = vld [vmem:[%s2716_s1 + $0x328] sm:$0xff]   ;;  %v2162_v24 = vld [vmem:[%s2716_s1 + $0x370] sm:$0xff]  }
  0x46   :  { %1953 = vmatprep.subr.bf16.mxu1 %v2112_v25  ;;  %v2161_v25 = vld [vmem:[%s2716_s1 + $0x3a8] sm:$0xff]  }
  0x47   :  { %1932 = vmatpush3.bf16.msra.mxu0 %v2111_v26  ;;  %v2164_v26 = vld [vmem:[%s2716_s1 + $0x3f0] sm:$0xff]  }
  0x48   :  { %1933 = vmatprep.subr.bf16.mxu0 %v2114_v27  ;;  %v2163_v27 = vld [vmem:[%s2716_s1 + $0x330] sm:$0xff]  }
  0x49   :  { %1954 = vmatpush3.bf16.msra.mxu1 %v2113_v28  ;;  %v2166_v28 = vld [vmem:[%s2716_s1 + $0x378] sm:$0xff]  }
  0x4a   :  { %1955 = vmatprep.subr.bf16.mxu1 %v2116_v29  ;;  %v2165_v29 = vld [vmem:[%s2716_s1 + $0x3b0] sm:$0xff]  }
  0x4b   :  { %1934 = vmatpush3.bf16.msra.mxu0 %v2115_v30  ;;  %v2168_v30 = vld [vmem:[%s2716_s1 + $0x3f8] sm:$0xff]  }
  0x4c   :  { %1935 = vmatprep.subr.bf16.mxu0 %v2118_v31  ;;  %v2167_v31 = vld [vmem:[%s2716_s1 + $0x338] sm:$0xff]  }
  0x4d   :  { %1956 = vmatpush3.bf16.msra.mxu1 %v2117_v32  ;;  %v396_v32 = vrot.slane %v2527_v52, %v2338_v41 }
  0x4e   :  { %1957 = vmatprep.subr.bf16.mxu1 %v2120_v33  ;;  %v2171_v33 = vld [vmem:[%s2716_s1 + $0x440] sm:$0xff]  }
  0x4f   :  { %1936 = vmatpush3.bf16.msra.mxu0 %v2119_v34  ;;  %v2170_v34 = vld [vmem:[%s2716_s1 + $0x3b8] sm:$0xff]  }
  0x50   :  { %1937 = vmatprep.subr.bf16.mxu0 %v2122_v35  ;;  %v2172_v35 = vld [vmem:[%s2716_s1 + $0x400] sm:$0xff]  }
  0x51   :  { %1958 = vmatpush3.bf16.msra.mxu1 %v2121_v36  ;;  %v412_v36 = vcombine.high %v396_v32, %v396_v32 }
  0x52   :  { %1959 = vmatprep.subr.bf16.mxu1 %v2124_v37  ;;  %v2173_v37 = vld [vmem:[%s2716_s1 + $0x448] sm:$0xff]  }
  0x53   :  { %1938 = vmatpush3.bf16.msra.mxu0 %v2123_v38  ;;  %v2174_v38 = vld [vmem:[%s2716_s1 + $0x408] sm:$0xff]  }
  0x54   :  { %1939 = vmatprep.subr.bf16.mxu0 %v2126_v39  ;;  %v2175_v39 = vld [vmem:[%s2716_s1 + $0x450] sm:$0xff]  }
  0x55   :  { %1960 = vmatpush3.bf16.msra.mxu1 %v2125_v40  ;;  %v1696_v40 = vld.sshfl [vmem:[%s2715_s0 + $0x10] sm:$0x11 pattern:$0x75316420] }
  0x56   :  { %1961 = vmatprep.subr.bf16.mxu1 %v2128_v42 }
  0x57   :  { %1940 = vmatpush3.bf16.msra.mxu0 %v2127_v43 }
  0x58   :  { %1941 = vmatprep.subr.bf16.mxu0 %v2130_v44 }
  0x59   :  { %1962 = vmatpush3.bf16.msra.mxu1 %v2129_v46 }
  0x5a   :  { %1963 = vmatprep.subr.bf16.mxu1 %v2132_v49 }
  0x5b   :  { %1942 = vmatpush3.bf16.msra.mxu0 %v2131_v50 }
  0x5c   :  { %1943 = vmatprep.subr.bf16.mxu0 %v2134_v53 }
  0x5d   :  { %1964 = vmatpush3.bf16.msra.mxu1 %v2133_v54 }
  0x5e   :  { %1965 = vmatprep.subr.bf16.mxu1 %v2136_v57 }
  0x5f   :  { %1944 = vmatpush3.bf16.msra.mxu0 %v2135_v58 }
  0x60   :  { %1973 = vmatprep.subr.bf16.mxu0 %v2138_v61 }
  0x61   :  { %1966 = vmatpush3.bf16.msra.mxu1 %v2137_v62 }
  0x62   :  { %1512 = vmatmul.mubr.bf16.vlgmr.msra.gmra.mrb[8].mxu0 %v389_v60  ;;  %1995 = vmatprep.subr.bf16.mxu1 %v2140_v0 }
  0x63   :  { %1974 = vmatpush3.bf16.msra.mxu0 %v2139_v1  ;;  %1591 = vmatprep.mubr.bf16.mxu0 %v410_v63 }
  0x64   :  { %1552 = vmatmul.mubr.bf16.vlgmr.msra.gmra.mrb[8].mxu1 %v411_v2  ;;  %1975 = vmatprep.subr.bf16.mxu0 %v2142_v3 }
  0x65   :  { %1996 = vmatpush3.bf16.msra.mxu1 %v2141_v4  ;;  %1631 = vmatprep.mubr.bf16.mxu1 %v414_v5 }
  0x66   :  { %1997 = vmatprep.subr.bf16.mxu1 %v2144_v6 }
  0x67   :  { %1976 = vmatpush3.bf16.msra.mxu0 %v2143_v7 }
  0x68   :  { %1977 = vmatprep.subr.bf16.mxu0 %v2146_v8 }
  0x69   :  { %1998 = vmatpush3.bf16.msra.mxu1 %v2145_v9 }
  0x6a   :  { %1999 = vmatprep.subr.bf16.mxu1 %v2148_v10 }
  0x6b   :  { %1978 = vmatpush3.bf16.msra.mxu0 %v2147_v11 }
  0x6c   :  { %1979 = vmatprep.subr.bf16.mxu0 %v2150_v12 }
  0x6d   :  { %2000 = vmatpush3.bf16.msra.mxu1 %v2149_v13 }
  0x6e   :  { %2001 = vmatprep.subr.bf16.mxu1 %v2152_v14 }
  0x6f   :  { %1980 = vmatpush3.bf16.msra.mxu0 %v2151_v15 }
  0x70   :  { %1981 = vmatprep.subr.bf16.mxu0 %v2154_v16 }
  0x71   :  { %2002 = vmatpush3.bf16.msra.mxu1 %v2153_v17 }
  0x72   :  { %2003 = vmatprep.subr.bf16.mxu1 %v2156_v18 }
  0x73   :  { %1982 = vmatpush3.bf16.msra.mxu0 %v2155_v19 }
  0x74   :  { %1983 = vmatprep.subr.bf16.mxu0 %v2158_v20 }
  0x75   :  { %2004 = vmatpush3.bf16.msra.mxu1 %v2157_v21 }
  0x76   :  { %2005 = vmatprep.subr.bf16.mxu1 %v2160_v22 }
  0x77   :  { %1984 = vmatpush3.bf16.msra.mxu0 %v2159_v23 }
  0x78   :  { %1985 = vmatprep.subr.bf16.mxu0 %v2162_v24 }
  0x79   :  { %2006 = vmatpush3.bf16.msra.mxu1 %v2161_v25 }
  0x7a   :  { %2007 = vmatprep.subr.bf16.mxu1 %v2164_v26 }
  0x7b   :  { %1986 = vmatpush3.bf16.msra.mxu0 %v2163_v27 }
  0x7c   :  { %1987 = vmatprep.subr.bf16.mxu0 %v2166_v28 }
  0x7d   :  { %2008 = vmatpush3.bf16.msra.mxu1 %v2165_v29 }
  0x7e   :  { %2009 = vmatprep.subr.bf16.mxu1 %v2168_v30 }
  0x7f   :  { %1988 = vmatpush3.bf16.msra.mxu0 %v2167_v31 }
  0x80   :  { %2017 = vmatprep.subr.bf16.mxu0 %v2171_v33 }
  0x81   :  { %2010 = vmatpush3.bf16.msra.mxu1 %v2170_v34 }
  0x82   :  { %1592 = vmatmul.mubr.bf16.vlgmr.msra.gmra.mrb[12].mxu0 %v396_v32 }
  0x83   :  { %2018 = vmatpush3.bf16.msra.mxu0 %v2172_v35 }
  0x84   :  { %1632 = vmatmul.mubr.bf16.vlgmr.msra.gmra.mrb[12].mxu1 %v412_v36  ;;  %2019 = vmatprep.subr.bf16.mxu0 %v2173_v37 }
  0x85   :  { %8 = vsyncpa [#allocation3], 0  ;;  %v2176_v42 = vld [vmem:[%s2716_s1 + $0x410] sm:$0xff]   ;;  %v422_v43 = vcombine.high %v1696_v40, %v1696_v40  ;;  %v2177_v44 = vld [vmem:[%s2716_s1 + $0x458] sm:$0xff]   ;;  %v429_v55 = vrot.slane %v1696_v40, %v2338_v41  ;;  %vm1679_vm0 = vcmask 74752  }
  0x86   :  { %v2178_v46 = vld [vmem:[%s2716_s1 + $0x418] sm:$0xff]   ;;  %v2179_v47 = vld [vmem:[%s2716_s1 + $0x460] sm:$0xff]   ;;  %v2181_v49 = vld [vmem:[%s2716_s1 + $0x468] sm:$0xff]  }
  0x87   :  { %2020 = vmatpush3.bf16.msra.mxu0 %v2174_v38  ;;  %v436_v45 = vrot.slane %v422_v43, %v2338_v41  ;;  %v2180_v48 = vld [vmem:[%s2716_s1 + $0x420] sm:$0xff]   ;;  %v2182_v50 = vld [vmem:[%s2716_s1 + $0x428] sm:$0xff]   ;;  %v2183_v51 = vld [vmem:[%s2716_s1 + $0x470] sm:$0xff]  }
  0x88   :  { %2021 = vmatprep.subr.bf16.mxu0 %v2175_v39  ;;  %v2184_v52 = vld [vmem:[%s2716_s1 + $0x430] sm:$0xff]   ;;  %v2185_v53 = vld [vmem:[%s2716_s1 + $0x478] sm:$0xff]   ;;  %v1695_v57 = vld [vmem:[%s2717_s2] ss:$0 sm:$0xff] }
  0x89   :  { %1671 = vmatprep.mubr.bf16.mxu0 %v436_v45  ;;  %v2186_v54 = vld [vmem:[%s2716_s1 + $0x438] sm:$0xff]   ;;  %s2212_s1 = smov [#allocation2]  }
  0x8a   :  { %s1687_s2 = sshll.u32 %s2212_s1, 4  ;;  %s1688_s2 = int_to_ptr.vmem [resolvable:$true] %s1687_s2 }
  0x8b   :  { %2022 = vmatpush3.bf16.msra.mxu0 %v2176_v42  ;;  %s2187_s10 = scalar_lea.vmem %s1688_s2, 32  ;;  %p2192_p1 = scmp.lt.s32.totalorder %s1688_s2, %s1688_s2 }
  0x8c   :  { %2023 = vmatprep.subr.bf16.mxu0 %v2177_v44  ;;  %p2188_p0 = scmp.ne.s32.totalorder %s1688_s2, %s2187_s10  ;;  %p2193_p2 = scmp.lt.s32.totalorder %s2187_s10, %s2187_s10 }
  0x8e   :  { %p2194_p3 = por %p2193_p2, %p2192_p1 }
  0x8f   :  { %2024 = vmatpush3.bf16.msra.mxu0 %v2178_v46 }
  0x90   :  { %2025 = vmatprep.subr.bf16.mxu0 %v2179_v47  ;;  %p2195_p4 = pnand %p2194_p3, %p2188_p0 }
  0x93   :  { %2026 = vmatpush3.bf16.msra.mxu0 %v2180_v48 }
  0x94   :  { %2027 = vmatprep.subr.bf16.mxu0 %v2181_v49 }
  0x97   :  { %2028 = vmatpush3.bf16.msra.mxu0 %v2182_v50 }
  0x98   :  { %2029 = vmatprep.subr.bf16.mxu0 %v2183_v51 }
  0x9b   :  { %2030 = vmatpush3.bf16.msra.mxu0 %v2184_v52 }
  0x9c   :  { %2031 = vmatprep.subr.bf16.mxu0 %v2185_v53 }
  0x9f   :  { %2032 = vmatpush3.bf16.msra.mxu0 %v2186_v54 }
  0xa2   :  { %1672 = vmatmul.mubr.bf16.vlgmr.msra.gmra.mrb[16].mxu0 %v429_v55 }
  0xf5   :  { %v1857_v56 = vpop.f32.mrb[0].mxu0 }
  0xf6   :  { %v1858_v58 = vpop.f32.mrb[1].mxu0 }
  0xf7   :  { %v1859_v59 = vadd.f32 %v1858_v58, %v1857_v56  ;;  %v1860_v60 = vpop.f32.mrb[2].mxu0  ;;  %v1879_v61 = vpop.f32.mrb[0].mxu1 }
  0xf8   :  { %v1861_v62 = vpop.f32.mrb[3].mxu0  ;;  %v1880_v63 = vpop.f32.mrb[1].mxu1 }
  0xf9   :  { %v1354_v0 = vadd.f32 %v1859_v59, %v1695_v57  ;;  %v1881_v1 = vadd.f32 %v1880_v63, %v1879_v61  ;;  %v1882_v2 = vpop.f32.mrb[2].mxu1 }
  0xfa   :  { %v1883_v3 = vpop.f32.mrb[3].mxu1 }
  0xfb   :  { %v1394_v4 = vadd.f32 %v1881_v1, %v1354_v0 }
 0x115   :  { %v1901_v5 = vpop.f32.mrb[4].mxu0 }
 0x116   :  { %v1902_v41 = vpop.f32.mrb[5].mxu0 }
 0x117   :  { %v1903_v6 = vadd.f32 %v1902_v41, %v1901_v5  ;;  %v1904_v7 = vpop.f32.mrb[6].mxu0  ;;  %v1923_v8 = vpop.f32.mrb[4].mxu1 }
 0x118   :  { %v1905_v9 = vpop.f32.mrb[7].mxu0  ;;  %v1924_v10 = vpop.f32.mrb[5].mxu1 }
 0x119   :  { %v1434_v11 = vadd.f32 %v1903_v6, %v1394_v4  ;;  %v1925_v12 = vadd.f32 %v1924_v10, %v1923_v8  ;;  %v1926_v13 = vpop.f32.mrb[6].mxu1 }
 0x11a   :  { %v1927_v14 = vpop.f32.mrb[7].mxu1 }
 0x11b   :  { %v1474_v15 = vadd.f32 %v1925_v12, %v1434_v11 }
 0x135   :  { %v1945_v16 = vpop.f32.mrb[8].mxu0 }
 0x136   :  { %v1946_v17 = vpop.f32.mrb[9].mxu0 }
 0x137   :  { %v1947_v18 = vadd.f32 %v1946_v17, %v1945_v16  ;;  %v1948_v19 = vpop.f32.mrb[10].mxu0  ;;  %v1967_v20 = vpop.f32.mrb[8].mxu1 }
 0x138   :  { %v1949_v21 = vpop.f32.mrb[11].mxu0  ;;  %v1968_v22 = vpop.f32.mrb[9].mxu1 }
 0x139   :  { %v1514_v23 = vadd.f32 %v1947_v18, %v1474_v15  ;;  %v1969_v24 = vadd.f32 %v1968_v22, %v1967_v20  ;;  %v1970_v25 = vpop.f32.mrb[10].mxu1 }
 0x13a   :  { %v1971_v26 = vpop.f32.mrb[11].mxu1 }
 0x13b   :  { %v1554_v27 = vadd.f32 %v1969_v24, %v1514_v23 }
 0x155   :  { %v1989_v28 = vpop.f32.mrb[12].mxu0 }
 0x156   :  { %v1990_v29 = vpop.f32.mrb[13].mxu0 }
 0x157   :  { %v1991_v30 = vadd.f32 %v1990_v29, %v1989_v28  ;;  %v1992_v31 = vpop.f32.mrb[14].mxu0  ;;  %v2011_v32 = vpop.f32.mrb[12].mxu1 }
 0x158   :  { %v1993_v33 = vpop.f32.mrb[15].mxu0  ;;  %v2012_v34 = vpop.f32.mrb[13].mxu1 }
 0x159   :  { %v1594_v35 = vadd.f32 %v1991_v30, %v1554_v27  ;;  %v2013_v36 = vadd.f32 %v2012_v34, %v2011_v32  ;;  %v2014_v37 = vpop.f32.mrb[14].mxu1 }
 0x15a   :  { %v2015_v38 = vpop.f32.mrb[15].mxu1 }
 0x15b   :  { %v1634_v39 = vadd.f32 %v2013_v36, %v1594_v35 }
 0x175   :  { %v2033_v40 = vpop.f32.mrb[16].mxu0 }
 0x176   :  { %v2034_v42 = vpop.f32.mrb[17].mxu0 }
 0x177   :  { %v2035_v43 = vadd.f32 %v2034_v42, %v2033_v40  ;;  %v2036_v44 = vpop.f32.mrb[18].mxu0 }
 0x178   :  { %v2037_v45 = vpop.f32.mrb[19].mxu0 }
 0x179   :  { %v1674_v46 = vadd.f32 %v2035_v43, %v1634_v39 }
 0x17b   :  { %1680 = vst.msk [vmem:[#allocation2] sm:$0x3] %vm1679_vm0, %v1674_v46 }
 0x17c   :  { %2198 = shalt.err (!%p2195_p4)
}
 0x17d   :  { %s2199_s13 = scalar_lea.hbm %s2718_s3, 32 }
 0x17e   :  { %p2200_p5 = scmp.ne.s32.totalorder %s2718_s3, %s2199_s13  ;;  %p2203_p6 = scmp.lt.u32.totalorder %s2199_s13, %s2718_s3 }
 0x180   :  { %p2205_p7 = pnand %p2203_p6, %p2200_p5 }
 0x182   :  { %2208 = shalt.err (!%p2205_p7)
}
 0x183   :  { %1690 = dma.vmem_to_hbm [thread:$0]  %s1688_s2, 32, %s2718_s3, [#allocation3]  }
 0x184   :  { %2209 = dma.done.wait [#allocation3], 32  }
 0x185   :  { %2210 = vsyncadd [#allocation3], 4294967264 }
 0x186   :  { %1694 = vsyncpa [#allocation3], 1 }

</bundles_post_ra>
